<compile_context>
chip_gen: v7x
topology: tpu7x:2x2x1
jax: 0.10.0
libtpu: 0.0.40
codegen_flags: <defaults>
</compile_context>

<pallas_src>
import functools

import jax
import jax.numpy as jnp
from jax.experimental import pallas as pl
from jax.experimental.pallas import tpu as pltpu


def _sdf_kernel(x_ref, w1_ref, wm_ref, b1c_ref, g_ref, beta_ref, w2_ref, b2_ref, o_ref):
    # x_ref: (tm, in_dim)        w1_ref: (in_dim, hidden)   wm_ref: (in_dim, 1)
    # b1c_ref/g_ref/beta_ref: (1, hidden) f32               w2_ref: (hidden, 1) f32
    # b2_ref: (1,) f32 in SMEM                              o_ref: (tm, 1)
    x = x_ref[...]

    # Layer 1 on the MXU (f32 accumulation). Bias is pre-centered (b1 - mean(b1)) so the
    # per-row feature mean of h is exactly x @ mean_j(w1[:, j]) — a second tiny MXU dot.
    h = jnp.dot(x, w1_ref[...], preferred_element_type=jnp.float32) + b1c_ref[...]
    mu = jnp.dot(x, wm_ref[...], preferred_element_type=jnp.float32)       # (tm, 1)

    # LayerNorm (biased variance, eps=1e-5) + affine, in f32. Only this reduce uses the XLU.
    c = h - mu
    var = jnp.mean(c * c, axis=-1, keepdims=True)
    hn = c * jax.lax.rsqrt(var + 1e-5) * g_ref[...] + beta_ref[...]        # rsqrt -> EUP

    # ReLU
    hr = jnp.maximum(hn, 0.0)

    # Layer 2: Linear(hidden -> 1) on the MXU; result is already a (tm, 1) column.
    out = jnp.dot(hr, w2_ref[...], preferred_element_type=jnp.float32)
    o_ref[...] = (out + b2_ref[0]).astype(o_ref.dtype)


def _round_up(a, b):
    return ((a + b - 1) // b) * b


@functools.partial(jax.jit, static_argnames=("tm",))
def signed_distance_field(x, w1, b1, gamma, beta, w2, b2, *, tm=4096):
    """x: [..., in_dim] -> (sdf: x.shape[:-1], None)."""
    assert tm % 128 == 0, "tm must be a multiple of 128"

    in_dim = x.shape[-1]
    hidden_dim = w1.shape[1]
    lead_shape = x.shape[:-1]

    xf = x.reshape(-1, in_dim)
    n = xf.shape[0]

    # Megacore-friendly tile: keep >=2 row tiles whenever n allows (v7x has 2 TensorCores
    # splitting the "parallel" grid axis), but never below one (8,128)-aligned tile.
    tm_eff = min(tm, max(128, _round_up(pl.cdiv(n, 2), 128)))
    num_tiles = pl.cdiv(n, tm_eff)              # no input padding; partial block handled

    # Canonicalize / pre-cast parameters (feature on the lane axis, all small params f32).
    w1_x = w1.astype(x.dtype)                                   # true bf16 MXU pass if x is bf16
    w1_mean = jnp.mean(w1.astype(jnp.float32), axis=1, keepdims=True)       # (in_dim, 1)
    b1_f = b1.reshape(1, hidden_dim).astype(jnp.float32)
    b1c = b1_f - jnp.mean(b1_f)                                 # pre-centered bias
    g_r = gamma.reshape(1, hidden_dim).astype(jnp.float32)
    beta_r = beta.reshape(1, hidden_dim).astype(jnp.float32)
    w2_col = w2.reshape(hidden_dim, 1).astype(jnp.float32)
    b2_s = b2.reshape(1).astype(jnp.float32)                    # scalar -> SMEM

    out = pl.pallas_call(
        _sdf_kernel,
        out_shape=jax.ShapeDtypeStruct((n, 1), x.dtype),
        grid_spec=pltpu.PrefetchScalarGridSpec(
            num_scalar_prefetch=0,
            grid=(num_tiles,),
            in_specs=[
                pl.BlockSpec((tm_eff, in_dim), lambda i: (i, 0)),
                pl.BlockSpec((in_dim, hidden_dim), lambda i: (0, 0)),
                pl.BlockSpec((in_dim, 1), lambda i: (0, 0)),
                pl.BlockSpec((1, hidden_dim), lambda i: (0, 0)),
                pl.BlockSpec((1, hidden_dim), lambda i: (0, 0)),
                pl.BlockSpec((1, hidden_dim), lambda i: (0, 0)),
                pl.BlockSpec((hidden_dim, 1), lambda i: (0, 0)),
                pl.BlockSpec(memory_space=pltpu.MemorySpace.SMEM),   # b2 scalar
            ],
            out_specs=pl.BlockSpec((tm_eff, 1), lambda i: (i, 0)),
        ),
        compiler_params=pltpu.CompilerParams(
            dimension_semantics=("parallel",),
            # 32 MiB: default on v6e/v7x, raises v5e's 16 MiB default so tm=4096 fits.
            vmem_limit_bytes=32 * 1024 * 1024,
        ),
    )(xf, w1_x, w1_mean, b1c, g_r, beta_r, w2_col, b2_s)

    sdf = out.reshape(-1).reshape(lead_shape)
    return sdf, None


def _reference(x, w1, b1, gamma, beta, w2, b2):
    h = x.astype(jnp.float32) @ w1 + b1
    mean = jnp.mean(h, axis=-1, keepdims=True)
    var = jnp.mean((h - mean) ** 2, axis=-1, keepdims=True)
    hn = (h - mean) * jax.lax.rsqrt(var + 1e-5) * gamma + beta
    hr = jnp.maximum(hn, 0.0)
    return (hr @ w2 + b2)[..., 0]


if __name__ == "__main__":
    in_dim = 32
    hidden_dim = 64
    batch, seq = 2, 8   # x: [2, 8, 32], flattened to 16 rows

    key = jax.random.PRNGKey(0)
    k_x, k_w1, k_b1, k_w2, k_b2 = jax.random.split(key, 5)

    x = jax.random.normal(k_x, (batch, seq, in_dim), dtype=jnp.float32)

    # Deterministic synthetic parameter init (shapes match the PyTorch module).
    w1 = jax.random.normal(k_w1, (in_dim, hidden_dim), jnp.float32) / jnp.sqrt(in_dim)
    b1 = jax.random.normal(k_b1, (1, hidden_dim), jnp.float32) * 0.01
    gamma = jnp.ones((1, hidden_dim), jnp.float32)   # nn.LayerNorm default weight
    beta = jnp.zeros((1, hidden_dim), jnp.float32)   # nn.LayerNorm default bias
    w2 = jax.random.normal(k_w2, (hidden_dim, 1), jnp.float32) / jnp.sqrt(hidden_dim)
    b2 = jax.random.normal(k_b2, (1, 1), jnp.float32) * 0.01

    sdf, state = signed_distance_field(x, w1, b1, gamma, beta, w2, b2)
    sdf = jax.block_until_ready(sdf)

    ref = _reference(x, w1, b1, gamma, beta, w2, b2)
    assert sdf.shape == (batch, seq)
    assert state is None
    assert jnp.allclose(sdf, ref, atol=1e-4, rtol=1e-4)

    print("KERNEL_OK")
</pallas_src>

<mosaic_0001>
module attributes {stable_mosaic.version = 11 : i64} {
  func.func @_sdf_kernel(%arg0: i32, %arg1: memref<128x32xf32, #tpu.memory_space<vmem>>, %arg2: memref<32x64xf32, #tpu.memory_space<vmem>>, %arg3: memref<32x1xf32, #tpu.memory_space<vmem>>, %arg4: memref<1x64xf32, #tpu.memory_space<vmem>>, %arg5: memref<1x64xf32, #tpu.memory_space<vmem>>, %arg6: memref<1x64xf32, #tpu.memory_space<vmem>>, %arg7: memref<64x1xf32, #tpu.memory_space<vmem>>, %arg8: memref<1xf32, #tpu.memory_space<smem>>, %arg9: memref<128x1xf32, #tpu.memory_space<vmem>>) attributes {dimension_semantics = [#tpu.dimension_semantics<parallel>], iteration_bounds = array<i64: 1>, scalar_prefetch = 0 : i64, scratch_operands = 0 : i64, tpu.core_type = #tpu.core_type<tc>, window_params = [{transform_indices = @transform_0, window_bounds = array<i64: 128, 32>}, {pipeline_mode = #tpu.pipeline_mode<synchronous>, transform_indices = @transform_1, window_bounds = array<i64: 32, 64>}, {pipeline_mode = #tpu.pipeline_mode<synchronous>, transform_indices = @transform_2, window_bounds = array<i64: 32, 1>}, {pipeline_mode = #tpu.pipeline_mode<synchronous>, transform_indices = @transform_3, window_bounds = array<i64: 1, 64>}, {pipeline_mode = #tpu.pipeline_mode<synchronous>, transform_indices = @transform_4, window_bounds = array<i64: 1, 64>}, {pipeline_mode = #tpu.pipeline_mode<synchronous>, transform_indices = @transform_5, window_bounds = array<i64: 1, 64>}, {pipeline_mode = #tpu.pipeline_mode<synchronous>, transform_indices = @transform_6, window_bounds = array<i64: 64, 1>}, {transform_indices = @transform_7, window_bounds = array<i64: 1>}, {transform_indices = @transform_8, window_bounds = array<i64: 128, 1>}]} {
    %c0 = arith.constant 0 : index
    %c0_0 = arith.constant 0 : index
    %0 = vector.load %arg1[%c0, %c0_0] : memref<128x32xf32, #tpu.memory_space<vmem>>, vector<128x32xf32>
    %c0_1 = arith.constant 0 : index
    %c0_2 = arith.constant 0 : index
    %1 = vector.load %arg2[%c0_1, %c0_2] : memref<32x64xf32, #tpu.memory_space<vmem>>, vector<32x64xf32>
    %cst = arith.constant dense<0.000000e+00> : vector<128x64xf32>
    %2 = tpu.matmul %0, %1, %cst {dimension_numbers = #tpu.dot_dimension_numbers<[1], [0], [0], [1], [0, 0, 1, 1], [], []>} : vector<128x32xf32>, vector<32x64xf32>, vector<128x64xf32> -> vector<128x64xf32>
    %c0_3 = arith.constant 0 : index
    %c0_4 = arith.constant 0 : index
    %3 = vector.load %arg4[%c0_3, %c0_4] : memref<1x64xf32, #tpu.memory_space<vmem>>, vector<1x64xf32>
    %4 = vector.broadcast %3 : vector<1x64xf32> to vector<128x64xf32>
    %5 = arith.addf %2, %4 : vector<128x64xf32>
    %c0_5 = arith.constant 0 : index
    %c0_6 = arith.constant 0 : index
    %6 = vector.load %arg3[%c0_5, %c0_6] : memref<32x1xf32, #tpu.memory_space<vmem>>, vector<32x1xf32>
    %cst_7 = arith.constant dense<0.000000e+00> : vector<128x1xf32>
    %7 = tpu.matmul %0, %6, %cst_7 {dimension_numbers = #tpu.dot_dimension_numbers<[1], [0], [0], [1], [0, 0, 1, 1], [], []>} : vector<128x32xf32>, vector<32x1xf32>, vector<128x1xf32> -> vector<128x1xf32>
    %8 = vector.broadcast %7 : vector<128x1xf32> to vector<128x64xf32>
    %9 = arith.subf %5, %8 : vector<128x64xf32>
    %10 = arith.mulf %9, %9 : vector<128x64xf32>
    %cst_8 = arith.constant dense<0.000000e+00> : vector<128xf32>
    %11 = vector.multi_reduction <add>, %10, %cst_8 [1] : vector<128x64xf32> to vector<128xf32>
    %12 = vector.shape_cast %11 : vector<128xf32> to vector<128x1xf32>
    %cst_9 = arith.constant 6.400000e+01 : f32
    %13 = vector.broadcast %cst_9 : f32 to vector<128x1xf32>
    %14 = arith.divf %12, %13 : vector<128x1xf32>
    %cst_10 = arith.constant 9.99999974E-6 : f32
    %15 = vector.broadcast %cst_10 : f32 to vector<128x1xf32>
    %16 = arith.addf %14, %15 : vector<128x1xf32>
    %17 = math.rsqrt %16 : vector<128x1xf32>
    %18 = vector.broadcast %17 : vector<128x1xf32> to vector<128x64xf32>
    %19 = arith.mulf %9, %18 : vector<128x64xf32>
    %c0_11 = arith.constant 0 : index
    %c0_12 = arith.constant 0 : index
    %20 = vector.load %arg5[%c0_11, %c0_12] : memref<1x64xf32, #tpu.memory_space<vmem>>, vector<1x64xf32>
    %21 = vector.broadcast %20 : vector<1x64xf32> to vector<128x64xf32>
    %22 = arith.mulf %19, %21 : vector<128x64xf32>
    %c0_13 = arith.constant 0 : index
    %c0_14 = arith.constant 0 : index
    %23 = vector.load %arg6[%c0_13, %c0_14] : memref<1x64xf32, #tpu.memory_space<vmem>>, vector<1x64xf32>
    %24 = vector.broadcast %23 : vector<1x64xf32> to vector<128x64xf32>
    %25 = arith.addf %22, %24 : vector<128x64xf32>
    %cst_15 = arith.constant 0.000000e+00 : f32
    %26 = vector.broadcast %cst_15 : f32 to vector<128x64xf32>
    %27 = arith.maximumf %25, %26 : vector<128x64xf32>
    %c0_16 = arith.constant 0 : index
    %c0_17 = arith.constant 0 : index
    %28 = vector.load %arg7[%c0_16, %c0_17] : memref<64x1xf32, #tpu.memory_space<vmem>>, vector<64x1xf32>
    %cst_18 = arith.constant dense<0.000000e+00> : vector<128x1xf32>
    %29 = tpu.matmul %27, %28, %cst_18 {dimension_numbers = #tpu.dot_dimension_numbers<[1], [0], [0], [1], [0, 0, 1, 1], [], []>} : vector<128x64xf32>, vector<64x1xf32>, vector<128x1xf32> -> vector<128x1xf32>
    %c0_19 = arith.constant 0 : index
    %30 = memref.load %arg8[%c0_19] : memref<1xf32, #tpu.memory_space<smem>>
    %31 = vector.broadcast %30 : f32 to vector<128x1xf32>
    %32 = arith.addf %29, %31 : vector<128x1xf32>
    %c0_20 = arith.constant 0 : index
    %c0_21 = arith.constant 0 : index
    %33 = vector.load %arg9[%c0_20, %c0_21] : memref<128x1xf32, #tpu.memory_space<vmem>>, vector<128x1xf32>
    tpu.vector_store %arg9[%c0_20, %c0_21], %32 {strides = array<i32>} : memref<128x1xf32, #tpu.memory_space<vmem>>, vector<128x1xf32>,
    return
  }
  func.func @transform_0(%arg0: i32) -> (i32, i32) {
    %c0_i32 = arith.constant 0 : i32
    %c0_i32_0 = arith.constant 0 : i32
    return %arg0, %c0_i32 : i32, i32
  }
  func.func @transform_1(%arg0: i32) -> (i32, i32) {
    %c0_i32 = arith.constant 0 : i32
    %c0_i32_0 = arith.constant 0 : i32
    %c0_i32_1 = arith.constant 0 : i32
    return %c0_i32, %c0_i32_0 : i32, i32
  }
  func.func @transform_2(%arg0: i32) -> (i32, i32) {
    %c0_i32 = arith.constant 0 : i32
    %c0_i32_0 = arith.constant 0 : i32
    %c0_i32_1 = arith.constant 0 : i32
    return %c0_i32, %c0_i32_0 : i32, i32
  }
  func.func @transform_3(%arg0: i32) -> (i32, i32) {
    %c0_i32 = arith.constant 0 : i32
    %c0_i32_0 = arith.constant 0 : i32
    %c0_i32_1 = arith.constant 0 : i32
    return %c0_i32, %c0_i32_0 : i32, i32
  }
  func.func @transform_4(%arg0: i32) -> (i32, i32) {
    %c0_i32 = arith.constant 0 : i32
    %c0_i32_0 = arith.constant 0 : i32
    %c0_i32_1 = arith.constant 0 : i32
    return %c0_i32, %c0_i32_0 : i32, i32
  }
  func.func @transform_5(%arg0: i32) -> (i32, i32) {
    %c0_i32 = arith.constant 0 : i32
    %c0_i32_0 = arith.constant 0 : i32
    %c0_i32_1 = arith.constant 0 : i32
    return %c0_i32, %c0_i32_0 : i32, i32
  }
  func.func @transform_6(%arg0: i32) -> (i32, i32) {
    %c0_i32 = arith.constant 0 : i32
    %c0_i32_0 = arith.constant 0 : i32
    %c0_i32_1 = arith.constant 0 : i32
    return %c0_i32, %c0_i32_0 : i32, i32
  }
  func.func @transform_7(%arg0: i32) -> i32 {
    %c0_i32 = arith.constant 0 : i32
    %c0_i32_0 = arith.constant 0 : i32
    return %c0_i32 : i32
  }
  func.func @transform_8(%arg0: i32) -> (i32, i32) {
    %c0_i32 = arith.constant 0 : i32
    %c0_i32_0 = arith.constant 0 : i32
    return %arg0, %c0_i32 : i32, i32
  }
}

</mosaic_0001>

<bundles_post_ra>
// kernel: signed_distance_field.1
= control target key start
LH: loop header
LB: loop body
LE: loop exit
PB: predicated region body
PF: predicated region fallthrough
CT: control target
= control target key end

     0   :  { %vm57_vm0 = vcmask 261120   ;;  %v1242_v28 = vmov 0   ;;  %vm512_vm1 = vcmask 523264   ;;  %vm891_vm2 = vcmask 7168   ;;  %s1624_s0 = inlined_call_operand.vmem [shape: f32[16,32], index: 0, kind: input, shape index: {}]   ;;  %s1625_s1 = inlined_call_operand.vmem [shape: f32[32,64], index: 1, kind: input, shape index: {}]   ;;  %s1626_s2 = inlined_call_operand.vmem [shape: f32[32,1], index: 2, kind: input, shape index: {}]   ;;  %s1627_s3 = inlined_call_operand.vmem [shape: f32[1,64], index: 3, kind: input, shape index: {}]   ;;  %s1628_s4 = inlined_call_operand.vmem [shape: f32[1,64], index: 4, kind: input, shape index: {}]   ;;  %s1629_s5 = inlined_call_operand.vmem [shape: f32[1,64], index: 5, kind: input, shape index: {}]   ;;  %s1630_s6 = inlined_call_operand.vmem [shape: f32[64,1], index: 6, kind: input, shape index: {}]   ;;  %s1631_s7 = inlined_call_operand.<no memory space> [shape: f32[1], index: 7, kind: input, shape index: {}]   ;;  %s1632_s8 = inlined_call_operand.vmem [shape: f32[16,1], index: 8, kind: output, shape index: {}]  }
   0x1   :  { %v46_v0 = vld [vmem:[%s1625_s1] sm:$0xff]  ;;  %v47_v1 = vld [vmem:[%s1625_s1 + $0x8] sm:$0xff]  ;;  %v48_v2 = vld [vmem:[%s1625_s1 + $0x10] sm:$0xff]  ;;  %1208 = vset.pattern.permute.xlu0 %v1242_v28  ;;  %1209 = vset.pattern.permute.xlu1 %v1242_v28 }
   0x2   :  { %v1171_v3 = vpack.c.bf16 %v47_v1, %v46_v0  ;;  %v49_v4 = vld [vmem:[%s1625_s1 + $0x18] sm:$0xff]  ;;  %v38_v5 = vld [vmem:[%s1624_s0 + $0x40] sm:$0xff]  ;;  %v252_v8 = vld [vmem:[%s1626_s2 + $0x8] sm:$0xff] }
   0x3   :  { %v1175_v6 = vpack.c.bf16 %v49_v4, %v48_v2  ;;  %1087 = vmatprep.mubr.msk.f32.mxu1 %vm57_vm0, %v38_v5  ;;  %v251_v7 = vld [vmem:[%s1626_s2] sm:$0xff]  ;;  %v253_v11 = vld [vmem:[%s1626_s2 + $0x10] sm:$0xff]  ;;  %v254_v12 = vld [vmem:[%s1626_s2 + $0x18] sm:$0xff] }
   0x4   :  { %1203 = vmatprep.subr.bf16.mxu1 %v1171_v3  ;;  %1172 = vmatprep.subr.bf16.mxu0 %v1171_v3  ;;  %v1179_v9 = vpack.c.bf16 %v252_v8, %v251_v7  ;;  %v30_v10 = vld [vmem:[%s1624_s0] sm:$0xff]  ;;  %v39_v13 = vld [vmem:[%s1624_s0 + $0x48] sm:$0xff]  ;;  %v40_v14 = vld [vmem:[%s1624_s0 + $0x50] sm:$0xff]  ;;  %v1183_v15 = vpack.c.bf16 %v254_v12, %v253_v11 }
   0x5   :  { %1205 = vmatpush3.bf16.msra.mxu1 %v1171_v3  ;;  %1174 = vmatpush3.bf16.msra.mxu0 %v1171_v3  ;;  %v31_v16 = vld [vmem:[%s1624_s0 + $0x8] sm:$0xff]  ;;  %v41_v17 = vld [vmem:[%s1624_s0 + $0x58] sm:$0xff]  ;;  %v32_v18 = vld [vmem:[%s1624_s0 + $0x10] sm:$0xff] }
   0x6   :  { %1204 = vmatprep.subr.bf16.mxu1 %v1175_v6  ;;  %1176 = vmatprep.subr.bf16.mxu0 %v1175_v6  ;;  %v42_v19 = vld [vmem:[%s1624_s0 + $0x60] sm:$0xff]  ;;  %v33_v20 = vld [vmem:[%s1624_s0 + $0x18] sm:$0xff]  ;;  %v43_v21 = vld [vmem:[%s1624_s0 + $0x68] sm:$0xff] }
   0x7   :  { %1075 = vmatprep.mubr.msk.f32.mxu0 %vm57_vm0, %v30_v10  ;;  %v34_v22 = vld [vmem:[%s1624_s0 + $0x20] sm:$0xff]  ;;  %v44_v23 = vld [vmem:[%s1624_s0 + $0x70] sm:$0xff]  ;;  %v35_v24 = vld [vmem:[%s1624_s0 + $0x28] sm:$0xff] }
   0x8   :  { %v36_v25 = vld [vmem:[%s1624_s0 + $0x30] sm:$0xff]  ;;  %v45_v26 = vld [vmem:[%s1624_s0 + $0x78] sm:$0xff]  ;;  %v1411_v61 = vld [vmem:[%s1627_s3] ss:$0 sm:$0xff] }
   0x9   :  { %1206 = vmatpush3.bf16.msra.mxu1 %v1175_v6  ;;  %1178 = vmatpush3.bf16.msra.mxu0 %v1175_v6  ;;  %v37_v27 = vld [vmem:[%s1624_s0 + $0x38] sm:$0xff] }
   0xa   :  { %1180 = vmatprep.subr.bf16.mxu1 %v1179_v9 }
   0xc   :  { %1088 = vmatmul.mubr.msk.f32.vlgmr.msra.gmra.mrb[0].mxu1 %vm57_vm0, %v39_v13  ;;  %1076 = vmatmul.mubr.msk.f32.vlgmr.msra.gmra.mrb[0].mxu0 %vm57_vm0, %v31_v16 }
   0xd   :  { %1182 = vmatpush3.bf16.msra.mxu1 %v1179_v9  ;;  %1090 = vmatprep.mubr.msk.f32.mxu1 %vm57_vm0, %v40_v14 }
   0xe   :  { %1184 = vmatprep.subr.bf16.mxu1 %v1183_v15  ;;  %1078 = vmatprep.mubr.msk.f32.mxu0 %vm57_vm0, %v32_v18 }
  0x10   :  { %1091 = vmatmul.mubr.msk.f32.gmra.mrb[2].mxu1 %vm57_vm0, %v41_v17  ;;  %1079 = vmatmul.mubr.msk.f32.gmra.mrb[2].mxu0 %vm57_vm0, %v33_v20 }
  0x11   :  { %1093 = vmatprep.mubr.msk.f32.mxu1 %vm57_vm0, %v42_v19  ;;  %1186 = vmatpush3.bf16.msra.mxu1 %v1183_v15 }
  0x12   :  { %1081 = vmatprep.mubr.msk.f32.mxu0 %vm57_vm0, %v34_v22 }
  0x14   :  { %1094 = vmatmul.mubr.msk.f32.gmra.mrb[4].mxu1 %vm57_vm0, %v43_v21  ;;  %1082 = vmatmul.mubr.msk.f32.gmra.mrb[4].mxu0 %vm57_vm0, %v35_v24 }
  0x15   :  { %1096 = vmatprep.mubr.msk.f32.mxu1 %vm57_vm0, %v44_v23  ;;  %1084 = vmatprep.mubr.msk.f32.mxu0 %vm57_vm0, %v36_v25 }
  0x18   :  { %1097 = vmatmul.mubr.msk.f32.gmra.mrb[6].mxu1 %vm57_vm0, %v45_v26  ;;  %1085 = vmatmul.mubr.msk.f32.gmra.mrb[6].mxu0 %vm57_vm0, %v37_v27 }
  0x19   :  { %1107 = vmatprep.mubr.msk.f32.mxu1 %vm57_vm0, %v30_v10 }
  0x1c   :  { %1108 = vmatmul.mubr.msk.f32.vlgmr.msra.gmra.mrb[8].mxu1 %vm57_vm0, %v31_v16 }
  0x1d   :  { %1110 = vmatprep.mubr.msk.f32.mxu1 %vm57_vm0, %v32_v18 }
  0x20   :  { %1111 = vmatmul.mubr.msk.f32.gmra.mrb[10].mxu1 %vm57_vm0, %v33_v20 }
  0x21   :  { %1113 = vmatprep.mubr.msk.f32.mxu1 %vm57_vm0, %v34_v22 }
  0x24   :  { %1114 = vmatmul.mubr.msk.f32.gmra.mrb[12].mxu1 %vm57_vm0, %v35_v24 }
  0x25   :  { %1116 = vmatprep.mubr.msk.f32.mxu1 %vm57_vm0, %v36_v25 }
  0x28   :  { %1117 = vmatmul.mubr.msk.f32.gmra.mrb[14].mxu1 %vm57_vm0, %v37_v27 }
  0x29   :  { %1119 = vmatprep.mubr.msk.f32.mxu1 %vm57_vm0, %v38_v5 }
  0x2c   :  { %1120 = vmatmul.mubr.msk.f32.gmra.mrb[16].mxu1 %vm57_vm0, %v39_v13 }
  0x2d   :  { %1122 = vmatprep.mubr.msk.f32.mxu1 %vm57_vm0, %v40_v14 }
  0x30   :  { %1123 = vmatmul.mubr.msk.f32.gmra.mrb[18].mxu1 %vm57_vm0, %v41_v17 }
  0x31   :  { %1125 = vmatprep.mubr.msk.f32.mxu1 %vm57_vm0, %v42_v19 }
  0x34   :  { %1126 = vmatmul.mubr.msk.f32.gmra.mrb[20].mxu1 %vm57_vm0, %v43_v21 }
  0x35   :  { %1128 = vmatprep.mubr.msk.f32.mxu1 %vm57_vm0, %v44_v23 }
  0x38   :  { %1129 = vmatmul.mubr.msk.f32.gmra.mrb[22].mxu1 %vm57_vm0, %v45_v26 }
  0xdf   :  { %v1392_v29 = vpop.f32.mrb[0].mxu1  ;;  %v1077_v30 = vpop.f32.mrb[0].mxu0 }
  0xe0   :  { %v1394_v31 = vpop.f32.mrb[1].mxu1  ;;  %v172_v40 = vpop.f32.mrb[1].mxu0  ;;  %v178_v62 = vadd.f32 %v1077_v30, %v1411_v61 }
  0xe1   :  { %v173_v1 = vadd.f32 %v1411_v61, %v172_v40  ;;  %v213_v30 = vadd.f32 %v1411_v61, %v1394_v31  ;;  %v218_v31 = vadd.f32 %v1392_v29, %v1411_v61 }
  0xe3   :  { %v1396_v32 = vpop.f32.mrb[2].mxu1  ;;  %v1080_v42 = vpop.f32.mrb[2].mxu0 }
  0xe4   :  { %v1398_v33 = vpop.f32.mrb[3].mxu1  ;;  %v182_v44 = vpop.f32.mrb[3].mxu0  ;;  %v188_v11 = vadd.f32 %v1080_v42, %v1411_v61 }
  0xe5   :  { %v183_v2 = vadd.f32 %v1411_v61, %v182_v44 }
  0xe7   :  { %v1400_v34 = vpop.f32.mrb[4].mxu1  ;;  %v1083_v45 = vpop.f32.mrb[4].mxu0 }
  0xe8   :  { %v1402_v35 = vpop.f32.mrb[5].mxu1  ;;  %v192_v46 = vpop.f32.mrb[5].mxu0  ;;  %v198_v16 = vadd.f32 %v1083_v45, %v1411_v61 }
  0xe9   :  { %v193_v9 = vadd.f32 %v1411_v61, %v192_v46  ;;  %v223_v46 = vadd.f32 %v1411_v61, %v1398_v33  ;;  %v228_v33 = vadd.f32 %v1396_v32, %v1411_v61 }
  0xeb   :  { %v1404_v36 = vpop.f32.mrb[6].mxu1  ;;  %v1086_v49 = vpop.f32.mrb[6].mxu0 }
  0xec   :  { %v1406_v37 = vpop.f32.mrb[7].mxu1  ;;  %v202_v50 = vpop.f32.mrb[7].mxu0  ;;  %v208_v25 = vadd.f32 %v1086_v49, %v1411_v61 }
  0xed   :  { %v203_v19 = vadd.f32 %v1411_v61, %v202_v50 }
  0xef   :  { %v1109_v38 = vpop.f32.mrb[8].mxu1 }
  0xf0   :  { %407 = vperm.xlu0 %1208, %v1109_v38   ;;  %v321_v39 = vpop.f32.mrb[9].mxu1 }
  0xf3   :  { %v1112_v41 = vpop.f32.mrb[10].mxu1 }
  0xf4   :  { %402 = vperm.xlu0 %1208, %v321_v39   ;;  %v331_v43 = vpop.f32.mrb[11].mxu1 }
  0xf5   :  { %412 = vperm.xlu1 %1209, %v331_v43  }
  0xf7   :  { %v1115_v47 = vpop.f32.mrb[12].mxu1 }
  0xf8   :  { %v341_v48 = vpop.f32.mrb[13].mxu1 }
  0xf9   :  { %417 = vperm.xlu1 %1209, %v1112_v41   ;;  %422 = vperm.xlu0 %1208, %v341_v48  }
  0xfb   :  { %v1118_v51 = vpop.f32.mrb[14].mxu1 }
  0xfc   :  { %v351_v52 = vpop.f32.mrb[15].mxu1 }
  0xfd   :  { %427 = vperm.xlu1 %1209, %v1115_v47   ;;  %432 = vperm.xlu0 %1208, %v351_v52  }
  0xff   :  { %v1121_v53 = vpop.f32.mrb[16].mxu1 }
 0x100   :  { %v361_v54 = vpop.f32.mrb[17].mxu1 }
 0x101   :  { %437 = vperm.xlu1 %1209, %v1118_v51   ;;  %442 = vperm.xlu0 %1208, %v361_v54   ;;  %v233_v54 = vadd.f32 %v1411_v61, %v1402_v35  ;;  %v238_v35 = vadd.f32 %v1400_v34, %v1411_v61  ;;  %v689_v34 = vld [vmem:[%s1630_s6 + $0x8] sm:$0xff] }
 0x103   :  { %v1124_v55 = vpop.f32.mrb[18].mxu1 }
 0x104   :  { %v371_v56 = vpop.f32.mrb[19].mxu1 }
 0x105   :  { %447 = vperm.xlu1 %1209, %v1121_v53   ;;  %452 = vperm.xlu0 %1208, %v371_v56  }
 0x107   :  { %v1127_v57 = vpop.f32.mrb[20].mxu1 }
 0x108   :  { %v381_v58 = vpop.f32.mrb[21].mxu1 }
 0x109   :  { %457 = vperm.xlu1 %1209, %v1124_v55   ;;  %462 = vperm.xlu0 %1208, %v381_v58  }
 0x10b   :  { %v1130_v59 = vpop.f32.mrb[22].mxu1 }
 0x10c   :  { %v391_v60 = vpop.f32.mrb[23].mxu1 }
 0x10d   :  { %467 = vperm.xlu1 %1209, %v1127_v57   ;;  %472 = vperm.xlu0 %1208, %v391_v60  }
 0x111   :  { %477 = vperm.xlu1 %1209, %v1130_v59  }
 0x16f   :  { %v408_v63 = vpop.permute.xlu0 %407 }
 0x170   :  { %v1414_v0 = vsub.f32 %v178_v62, %v408_v63  ;;  %v243_v63 = vadd.f32 %v1411_v61, %v1406_v37 }
 0x172   :  { %v497_v3 = vmul.f32 %v1414_v0, %v1414_v0 }
 0x173   :  { %v403_v4 = vpop.permute.xlu0 %402 }
 0x174   :  { %v1420_v5 = vsub.f32 %v173_v1, %v403_v4  ;;  %v413_v6 = vpop.permute.xlu1 %412  ;;  %v516_v7 = vsel %vm512_vm1, %v497_v3, 0.0 }
 0x175   :  { %v1423_v8 = vsub.f32 %v183_v2, %v413_v6  ;;  %517 = vadd.xlane.f32.xlu1 %v516_v7  ;;  %v688_v7 = vld [vmem:[%s1630_s6] sm:$0xff] }
 0x176   :  { %v496_v10 = vmul.f32 %v1420_v5, %v1420_v5 }
 0x177   :  { %v498_v12 = vmul.f32 %v1423_v8, %v1423_v8 }
 0x178   :  { %v418_v13 = vpop.permute.xlu1 %417  ;;  %v423_v14 = vpop.permute.xlu0 %422  ;;  %v513_v15 = vsel %vm512_vm1, %v496_v10, 0.0 }
 0x179   :  { %v1433_v17 = vsub.f32 %v188_v11, %v418_v13  ;;  %v1435_v18 = vsub.f32 %v193_v9, %v423_v14  ;;  %514 = vadd.xlane.f32.xlu0 %v513_v15  ;;  %v519_v20 = vsel %vm512_vm1, %v498_v12, 0.0  ;;  %v1187_v11 = vpack.c.bf16 %v689_v34, %v688_v7 }
 0x17a   :  { %v248_v12 = vadd.f32 %v1404_v36, %v1411_v61 }
 0x17b   :  { %v500_v21 = vmul.f32 %v1435_v18, %v1435_v18  ;;  %v499_v24 = vmul.f32 %v1433_v17, %v1433_v17  ;;  %1188 = vmatprep.subr.bf16.mxu0 %v1187_v11 }
 0x17c   :  { %v428_v22 = vpop.permute.xlu1 %427  ;;  %v433_v23 = vpop.permute.xlu0 %432  ;;  %1190 = vmatpush3.bf16.msra.mxu0 %v1187_v11 }
 0x17d   :  { %v1444_v26 = vsub.f32 %v198_v16, %v428_v22  ;;  %v1446_v27 = vsub.f32 %v203_v19, %v433_v23  ;;  %520 = vadd.xlane.f32.xlu0 %v519_v20  ;;  %v525_v28 = vsel %vm512_vm1, %v500_v21, 0.0  ;;  %v522_v41 = vsel %vm512_vm1, %v499_v24, 0.0  ;;  %v690_v19 = vld [vmem:[%s1630_s6 + $0x10] sm:$0xff]  ;;  %v691_v20 = vld [vmem:[%s1630_s6 + $0x18] sm:$0xff]  ;;  %v692_v24 = vld [vmem:[%s1630_s6 + $0x20] sm:$0xff] }
 0x17e   :  { %526 = vadd.xlane.f32.xlu1 %v525_v28  ;;  %v1191_v61 = vpack.c.bf16 %v691_v20, %v690_v19 }
 0x17f   :  { %v502_v38 = vmul.f32 %v1446_v27, %v1446_v27  ;;  %v501_v42 = vmul.f32 %v1444_v26, %v1444_v26 }
 0x180   :  { %v438_v39 = vpop.permute.xlu1 %437  ;;  %v443_v40 = vpop.permute.xlu0 %442  ;;  %1192 = vmatprep.subr.bf16.mxu0 %v1191_v61 }
 0x181   :  { %v1456_v43 = vsub.f32 %v208_v25, %v438_v39  ;;  %v1458_v44 = vsub.f32 %v213_v30, %v443_v40  ;;  %523 = vadd.xlane.f32.xlu0 %v522_v41  ;;  %v531_v45 = vsel %vm512_vm1, %v502_v38, 0.0  ;;  %v528_v50 = vsel %vm512_vm1, %v501_v42, 0.0  ;;  %v693_v25 = vld [vmem:[%s1630_s6 + $0x28] sm:$0xff]  ;;  %1194 = vmatpush3.bf16.msra.mxu0 %v1191_v61  ;;  %v694_v38 = vld [vmem:[%s1630_s6 + $0x30] sm:$0xff]  ;;  %v695_v39 = vld [vmem:[%s1630_s6 + $0x38] sm:$0xff] }
 0x182   :  { %532 = vadd.xlane.f32.xlu1 %v531_v45  ;;  %v1195_v28 = vpack.c.bf16 %v693_v25, %v692_v24  ;;  %v1199_v40 = vpack.c.bf16 %v695_v39, %v694_v38 }
 0x183   :  { %v504_v47 = vmul.f32 %v1458_v44, %v1458_v44  ;;  %v503_v51 = vmul.f32 %v1456_v43, %v1456_v43 }
 0x184   :  { %v448_v48 = vpop.permute.xlu1 %447  ;;  %v453_v49 = vpop.permute.xlu0 %452  ;;  %1196 = vmatprep.subr.bf16.mxu0 %v1195_v28 }
 0x185   :  { %v1470_v52 = vsub.f32 %v218_v31, %v448_v48  ;;  %v1472_v53 = vsub.f32 %v223_v46, %v453_v49  ;;  %529 = vadd.xlane.f32.xlu0 %v528_v50  ;;  %v537_v29 = vsel %vm512_vm1, %v504_v47, 0.0  ;;  %v534_v58 = vsel %vm512_vm1, %v503_v51, 0.0  ;;  %1198 = vmatpush3.bf16.msra.mxu0 %v1195_v28 }
 0x186   :  { %538 = vadd.xlane.f32.xlu1 %v537_v29  ;;  %1200 = vmatprep.subr.bf16.mxu0 %v1199_v40 }
 0x187   :  { %v506_v55 = vmul.f32 %v1472_v53, %v1472_v53  ;;  %v505_v59 = vmul.f32 %v1470_v52, %v1470_v52 }
 0x188   :  { %v458_v56 = vpop.permute.xlu1 %457  ;;  %v463_v57 = vpop.permute.xlu0 %462 }
 0x189   :  { %v1484_v60 = vsub.f32 %v228_v33, %v458_v56  ;;  %v1486_v62 = vsub.f32 %v233_v54, %v463_v57  ;;  %535 = vadd.xlane.f32.xlu0 %v534_v58  ;;  %v543_v32 = vsel %vm512_vm1, %v506_v55, 0.0  ;;  %v540_v4 = vsel %vm512_vm1, %v505_v59, 0.0  ;;  %1202 = vmatpush3.bf16.msra.mxu0 %v1199_v40 }
 0x18a   :  { %544 = vadd.xlane.f32.xlu1 %v543_v32  ;;  %v1544_v32 = vld [vmem:[%s1628_s4] ss:$0 sm:$0xff] }
 0x18b   :  { %v508_v1 = vmul.f32 %v1486_v62, %v1486_v62  ;;  %v507_v6 = vmul.f32 %v1484_v60, %v1484_v60 }
 0x18c   :  { %v468_v2 = vpop.permute.xlu1 %467  ;;  %v473_v3 = vpop.permute.xlu0 %472 }
 0x18d   :  { %v1504_v9 = vsub.f32 %v238_v35, %v468_v2  ;;  %v1506_v37 = vsub.f32 %v243_v63, %v473_v3  ;;  %541 = vadd.xlane.f32.xlu0 %v540_v4  ;;  %v549_v10 = vsel %vm512_vm1, %v508_v1, 0.0  ;;  %v546_v15 = vsel %vm512_vm1, %v507_v6, 0.0 }
 0x18e   :  { %550 = vadd.xlane.f32.xlu1 %v549_v10  ;;  %v1551_v10 = vld [vmem:[%s1629_s5] ss:$0 sm:$0xff] }
 0x18f   :  { %v510_v13 = vmul.f32 %v1506_v37, %v1506_v37  ;;  %v509_v16 = vmul.f32 %v1504_v9, %v1504_v9 }
 0x190   :  { %v478_v14 = vpop.permute.xlu1 %477 }
 0x191   :  { %v1522_v21 = vsub.f32 %v248_v12, %v478_v14  ;;  %547 = vadd.xlane.f32.xlu0 %v546_v15  ;;  %v555_v36 = vsel %vm512_vm1, %v510_v13, 0.0  ;;  %v552_v22 = vsel %vm512_vm1, %v509_v16, 0.0 }
 0x192   :  { %556 = vadd.xlane.f32.xlu1 %v555_v36 }
 0x193   :  { %v511_v23 = vmul.f32 %v1522_v21, %v1522_v21 }
 0x195   :  { %553 = vadd.xlane.f32.xlu0 %v552_v22  ;;  %v558_v30 = vsel %vm512_vm1, %v511_v23, 0.0 }
 0x199   :  { %559 = vadd.xlane.f32.xlu0 %v558_v30 }
 0x202   :  { %v518_v41 = vpop.xlane.xlu1 %517 }
 0x203   :  { %v563_v42 = vmul.f32 0.015625, %v518_v41 }
 0x205   :  { %v579_v45 = vadd.f32 1e-05, %v563_v42 }
 0x206   :  { %v515_v31 = vpop.xlane.xlu0 %514 }
 0x207   :  { %1210 = vrsqrt.f32 %v579_v45  ;;  %v562_v46 = vmul.f32 0.015625, %v515_v31 }
 0x209   :  { %v578_v47 = vadd.f32 1e-05, %v562_v46 }
 0x20a   :  { %v521_v48 = vpop.xlane.xlu0 %520 }
 0x20b   :  { %1212 = vrsqrt.f32 %v578_v47  ;;  %v564_v49 = vmul.f32 0.015625, %v521_v48  ;;  %v527_v50 = vpop.xlane.xlu1 %526 }
 0x20c   :  { %v566_v51 = vmul.f32 0.015625, %v527_v50 }
 0x20d   :  { %v580_v29 = vadd.f32 1e-05, %v564_v49 }
 0x20e   :  { %v582_v33 = vadd.f32 1e-05, %v566_v51  ;;  %v524_v54 = vpop.xlane.xlu0 %523 }
 0x20f   :  { %1214 = vrsqrt.f32 %v580_v29  ;;  %v565_v55 = vmul.f32 0.015625, %v524_v54  ;;  %v533_v56 = vpop.xlane.xlu1 %532 }
 0x210   :  { %1216 = vrsqrt.f32 %v582_v33  ;;  %v568_v57 = vmul.f32 0.015625, %v533_v56 }
 0x211   :  { %v1211_v58 = vpop.eup %1210  ;;  %v581_v59 = vadd.f32 1e-05, %v565_v55 }
 0x212   :  { %v611_v35 = vmul.f32 %v1211_v58, %v1414_v0  ;;  %v584_v63 = vadd.f32 1e-05, %v568_v57  ;;  %v530_v1 = vpop.xlane.xlu0 %529 }
 0x213   :  { %1218 = vrsqrt.f32 %v581_v59  ;;  %v567_v2 = vmul.f32 0.015625, %v530_v1  ;;  %v539_v3 = vpop.xlane.xlu1 %538 }
 0x214   :  { %1220 = vrsqrt.f32 %v584_v63  ;;  %v570_v4 = vmul.f32 0.015625, %v539_v3  ;;  %v634_v7 = vmul.f32 %v1544_v32, %v611_v35 }
 0x215   :  { %v1213_v6 = vpop.eup %1212  ;;  %v583_v34 = vadd.f32 1e-05, %v567_v2 }
 0x216   :  { %v586_v11 = vadd.f32 1e-05, %v570_v4  ;;  %v536_v12 = vpop.xlane.xlu0 %535  ;;  %v610_v0 = vmul.f32 %v1213_v6, %v1420_v5  ;;  %v657_v20 = vadd.f32 %v1551_v10, %v634_v7 }
 0x217   :  { %1222 = vrsqrt.f32 %v583_v34  ;;  %v569_v13 = vmul.f32 0.015625, %v536_v12  ;;  %v545_v14 = vpop.xlane.xlu1 %544 }
 0x218   :  { %1224 = vrsqrt.f32 %v586_v11  ;;  %v572_v15 = vmul.f32 0.015625, %v545_v14  ;;  %v633_v16 = vmul.f32 %v1544_v32, %v610_v0  ;;  %v673_v42 = vmax.f32 %v657_v20, 0.0 }
 0x219   :  { %v1215_v19 = vpop.eup %1214  ;;  %v585_v36 = vadd.f32 1e-05, %v569_v13 }
 0x21a   :  { %v1217_v61 = vpop.eup %1216  ;;  %v588_v22 = vadd.f32 1e-05, %v572_v15  ;;  %v542_v23 = vpop.xlane.xlu0 %541  ;;  %v656_v24 = vadd.f32 %v1551_v10, %v633_v16  ;;  %v612_v25 = vmul.f32 %v1215_v19, %v1423_v8 }
 0x21b   :  { %1226 = vrsqrt.f32 %v585_v36  ;;  %v571_v5 = vmul.f32 0.015625, %v542_v23  ;;  %v551_v28 = vpop.xlane.xlu1 %550  ;;  %v614_v30 = vmul.f32 %v1217_v61, %v1435_v18 }
 0x21c   :  { %1228 = vrsqrt.f32 %v588_v22  ;;  %v574_v38 = vmul.f32 0.015625, %v551_v28  ;;  %v672_v39 = vmax.f32 %v656_v24, 0.0  ;;  %v635_v40 = vmul.f32 %v1544_v32, %v612_v25 }
 0x21d   :  { %v1219_v41 = vpop.eup %1218  ;;  %v587_v45 = vadd.f32 1e-05, %v571_v5  ;;  %v637_v31 = vmul.f32 %v1544_v32, %v614_v30 }
 0x21e   :  { %v1221_v46 = vpop.eup %1220  ;;  %v590_v47 = vadd.f32 1e-05, %v574_v38  ;;  %1147 = vmatprep.mubr.msk.f32.mxu0 %vm512_vm1, %v672_v39  ;;  %v548_v8 = vpop.xlane.xlu0 %547  ;;  %v658_v48 = vadd.f32 %v1551_v10, %v635_v40  ;;  %v613_v49 = vmul.f32 %v1219_v41, %v1433_v17 }
 0x21f   :  { %1230 = vrsqrt.f32 %v587_v45  ;;  %v573_v18 = vmul.f32 0.015625, %v548_v8  ;;  %v557_v50 = vpop.xlane.xlu1 %556  ;;  %1148 = vmatmul.mubr.msk.f32.vlgmr.msra.gmra.mrb[8].mxu0 %vm512_vm1, %v673_v42  ;;  %v616_v51 = vmul.f32 %v1221_v46, %v1446_v27  ;;  %v660_v57 = vadd.f32 %v1551_v10, %v637_v31 }
 0x220   :  { %1232 = vrsqrt.f32 %v590_v47  ;;  %v576_v29 = vmul.f32 0.015625, %v557_v50  ;;  %v674_v33 = vmax.f32 %v658_v48, 0.0  ;;  %v636_v54 = vmul.f32 %v1544_v32, %v613_v49 }
 0x221   :  { %v1223_v55 = vpop.eup %1222  ;;  %v589_v56 = vadd.f32 1e-05, %v573_v18  ;;  %v639_v58 = vmul.f32 %v1544_v32, %v616_v51  ;;  %v676_v34 = vmax.f32 %v660_v57, 0.0 }
 0x222   :  { %v1225_v59 = vpop.eup %1224  ;;  %v592_v17 = vadd.f32 1e-05, %v576_v29  ;;  %1150 = vmatprep.mubr.msk.f32.mxu0 %vm512_vm1, %v674_v33  ;;  %v554_v35 = vpop.xlane.xlu0 %553  ;;  %v659_v63 = vadd.f32 %v1551_v10, %v636_v54  ;;  %v615_v27 = vmul.f32 %v1223_v55, %v1444_v26 }
 0x223   :  { %1234 = vrsqrt.f32 %v589_v56  ;;  %v575_v1 = vmul.f32 0.015625, %v554_v35  ;;  %v618_v2 = vmul.f32 %v1225_v59, %v1458_v44  ;;  %v662_v11 = vadd.f32 %v1551_v10, %v639_v58 }
 0x224   :  { %1236 = vrsqrt.f32 %v592_v17  ;;  %v675_v3 = vmax.f32 %v659_v63, 0.0  ;;  %v638_v4 = vmul.f32 %v1544_v32, %v615_v27 }
 0x225   :  { %v1227_v6 = vpop.eup %1226  ;;  %v591_v7 = vadd.f32 1e-05, %v575_v1  ;;  %v641_v12 = vmul.f32 %v1544_v32, %v618_v2  ;;  %v678_v61 = vmax.f32 %v662_v11, 0.0 }
 0x226   :  { %v1229_v0 = vpop.eup %1228  ;;  %1151 = vmatmul.mubr.msk.f32.gmra.mrb[10].mxu0 %vm512_vm1, %v675_v3  ;;  %v560_v13 = vpop.xlane.xlu0 %559  ;;  %v661_v26 = vadd.f32 %v1551_v10, %v638_v4  ;;  %v617_v14 = vmul.f32 %v1227_v6, %v1456_v43 }
 0x227   :  { %1238 = vrsqrt.f32 %v591_v7  ;;  %v577_v44 = vmul.f32 0.015625, %v560_v13  ;;  %1153 = vmatprep.mubr.msk.f32.mxu0 %vm512_vm1, %v676_v34  ;;  %v620_v15 = vmul.f32 %v1229_v0, %v1472_v53  ;;  %v664_v22 = vadd.f32 %v1551_v10, %v641_v12 }
 0x228   :  { %v677_v16 = vmax.f32 %v661_v26, 0.0  ;;  %v640_v19 = vmul.f32 %v1544_v32, %v617_v14 }
 0x229   :  { %v1231_v20 = vpop.eup %1230  ;;  %v593_v36 = vadd.f32 1e-05, %v577_v44  ;;  %v643_v23 = vmul.f32 %v1544_v32, %v620_v15  ;;  %v680_v38 = vmax.f32 %v664_v22, 0.0 }
 0x22a   :  { %v1233_v24 = vpop.eup %1232  ;;  %1154 = vmatmul.mubr.msk.f32.gmra.mrb[12].mxu0 %vm512_vm1, %v677_v16  ;;  %v663_v43 = vadd.f32 %v1551_v10, %v640_v19  ;;  %v619_v25 = vmul.f32 %v1231_v20, %v1470_v52 }
 0x22b   :  { %1240 = vrsqrt.f32 %v593_v36  ;;  %1156 = vmatprep.mubr.msk.f32.mxu0 %vm512_vm1, %v678_v61  ;;  %v622_v53 = vmul.f32 %v1233_v24, %v1486_v62  ;;  %v666_v39 = vadd.f32 %v1551_v10, %v643_v23 }
 0x22c   :  { %v679_v5 = vmax.f32 %v663_v43, 0.0  ;;  %v642_v28 = vmul.f32 %v1544_v32, %v619_v25 }
 0x22d   :  { %v1235_v30 = vpop.eup %1234  ;;  %v645_v40 = vmul.f32 %v1544_v32, %v622_v53  ;;  %v682_v47 = vmax.f32 %v666_v39, 0.0 }
 0x22e   :  { %v1237_v41 = vpop.eup %1236  ;;  %1157 = vmatmul.mubr.msk.f32.gmra.mrb[14].mxu0 %vm512_vm1, %v679_v5  ;;  %v665_v42 = vadd.f32 %v1551_v10, %v642_v28  ;;  %v621_v52 = vmul.f32 %v1235_v30, %v1484_v60 }
 0x22f   :  { %v624_v45 = vmul.f32 %v1237_v41, %v1506_v37  ;;  %1159 = vmatprep.mubr.msk.f32.mxu0 %vm512_vm1, %v680_v38  ;;  %v668_v8 = vadd.f32 %v1551_v10, %v645_v40 }
 0x230   :  { %v681_v62 = vmax.f32 %v665_v42, 0.0  ;;  %v644_v31 = vmul.f32 %v1544_v32, %v621_v52 }
 0x231   :  { %v1239_v46 = vpop.eup %1238  ;;  %v647_v48 = vmul.f32 %v1544_v32, %v624_v45  ;;  %v684_v51 = vmax.f32 %v668_v8, 0.0 }
 0x232   :  { %1160 = vmatmul.mubr.msk.f32.gmra.mrb[16].mxu0 %vm512_vm1, %v681_v62  ;;  %v667_v49 = vadd.f32 %v1551_v10, %v644_v31  ;;  %v623_v18 = vmul.f32 %v1239_v46, %v1504_v9 }
 0x233   :  { %1162 = vmatprep.mubr.msk.f32.mxu0 %vm512_vm1, %v682_v47  ;;  %v670_v29 = vadd.f32 %v1551_v10, %v647_v48 }
 0x234   :  { %v683_v60 = vmax.f32 %v667_v49, 0.0  ;;  %v646_v37 = vmul.f32 %v1544_v32, %v623_v18 }
 0x235   :  { %v1241_v50 = vpop.eup %1240  ;;  %v686_v56 = vmax.f32 %v670_v29, 0.0 }
 0x236   :  { %v625_v33 = vmul.f32 %v1241_v50, %v1522_v21  ;;  %1163 = vmatmul.mubr.msk.f32.gmra.mrb[18].mxu0 %vm512_vm1, %v683_v60  ;;  %v669_v54 = vadd.f32 %v1551_v10, %v646_v37  ;;  %v697_v21 = vstv %s1631_s7 }
 0x237   :  { %1165 = vmatprep.mubr.msk.f32.mxu0 %vm512_vm1, %v684_v51 }
 0x238   :  { %v685_v55 = vmax.f32 %v669_v54, 0.0  ;;  %v648_v9 = vmul.f32 %v1544_v32, %v625_v33 }
 0x23a   :  { %1166 = vmatmul.mubr.msk.f32.gmra.mrb[20].mxu0 %vm512_vm1, %v685_v55  ;;  %v671_v57 = vadd.f32 %v1551_v10, %v648_v9 }
 0x23b   :  { %1168 = vmatprep.mubr.msk.f32.mxu0 %vm512_vm1, %v686_v56 }
 0x23c   :  { %v687_v58 = vmax.f32 %v671_v57, 0.0 }
 0x23e   :  { %1169 = vmatmul.mubr.msk.f32.gmra.mrb[22].mxu0 %vm512_vm1, %v687_v58 }
 0x2f2   :  { %v1149_v59 = vpop.f32.mrb[8].mxu0 }
 0x2f3   :  { %v818_v17 = vadd.f32 %v1149_v59, %v697_v21  ;;  %v812_v35 = vpop.f32.mrb[9].mxu0 }
 0x2f4   :  { %v813_v63 = vadd.f32 %v812_v35, %v697_v21 }
 0x2f5   :  { %893 = vst.msk [vmem:[#allocation3 + $0x8] sm:$0xff] %vm891_vm2, %v818_v17 }
 0x2f6   :  { %892 = vst.msk [vmem:[#allocation3] sm:$0xff] %vm891_vm2, %v813_v63 }
 0x2f9   :  { %v1152_v32 = vpop.f32.mrb[10].mxu0 }
 0x2fa   :  { %v822_v27 = vpop.f32.mrb[11].mxu0 }
 0x2fc   :  { %v941_v1 = vld [vmem:[#allocation3 + $0x8] sm:$0xff] }
 0x2fd   :  { %942 = vst [vmem:[%s1632_s8 + $0x8] sm:$0xff] %v941_v1  ;;  %v939_v10 = vld [vmem:[#allocation3] sm:$0xff]  ;;  %v1155_v2 = vpop.f32.mrb[12].mxu0 }
 0x2fe   :  { %940 = vst [vmem:[%s1632_s8] sm:$0xff] %v939_v10  ;;  %v832_v3 = vpop.f32.mrb[13].mxu0 }
 0x301   :  { %v1158_v4 = vpop.f32.mrb[14].mxu0 }
 0x302   :  { %v842_v6 = vpop.f32.mrb[15].mxu0 }
 0x305   :  { %v1161_v7 = vpop.f32.mrb[16].mxu0 }
 0x306   :  { %v852_v34 = vpop.f32.mrb[17].mxu0 }
 0x309   :  { %v1164_v11 = vpop.f32.mrb[18].mxu0 }
 0x30a   :  { %v862_v12 = vpop.f32.mrb[19].mxu0 }
 0x30d   :  { %v1167_v0 = vpop.f32.mrb[20].mxu0 }
 0x30e   :  { %v872_v13 = vpop.f32.mrb[21].mxu0 }
 0x311   :  { %v1170_v26 = vpop.f32.mrb[22].mxu0 }
 0x312   :  { %v882_v14 = vpop.f32.mrb[23].mxu0 }

</bundles_post_ra>
